<compile_context>
chip_gen: v6e
topology: v6e:2x2x1
jax: 0.10.0
libtpu: 0.0.40
codegen_flags: <defaults>
</compile_context>

<pallas_src>
import functools

import jax
import jax.numpy as jnp
from jax.experimental import pallas as pl
from jax.experimental.pallas import tpu as pltpu

LN_EPS = 1e-5


def _round_up(x, m):
    return (x + m - 1) // m * m


def _pad_to(a, shape):
    pads = [(0, t - s) for s, t in zip(a.shape, shape)]
    if all(p == (0, 0) for p in pads):
        return a
    return jnp.pad(a, pads)


def _layernorm(h, gamma, beta, n_valid):
    """LayerNorm over the last axis of f32 `h`.

    Padded lanes of `h` are exactly zero (zero-padded weight columns/biases
    guarantee it), so sums over all lanes equal sums over the valid lanes and
    the one-pass E[x^2] - mean^2 form needs no lane mask.  gamma/beta are zero
    on padded lanes, so padded lanes of the result are also exactly zero.
    """
    inv_n = 1.0 / n_valid
    mean = jnp.sum(h, axis=-1, keepdims=True) * inv_n
    ex2 = jnp.sum(h * h, axis=-1, keepdims=True) * inv_n
    var = jnp.maximum(ex2 - mean * mean, 0.0)
    return (h - mean) * jax.lax.rsqrt(var + LN_EPS) * gamma + beta


def mlp_kernel(x_ref, w1_ref, w2_ref, w3_ref, vec_ref, o_ref, *, h_real):
    f32 = jnp.float32

    # Packed parameter vectors: rows = [b1, g1, beta1, b2, g2, beta2, b3, 0].
    vecs = vec_ref[...].astype(f32)
    b1, g1, be1 = vecs[0:1], vecs[1:2], vecs[2:3]
    b2, g2, be2 = vecs[3:4], vecs[4:5], vecs[5:6]
    b3 = vecs[6:7]

    # ---- block 1: Linear -> LayerNorm -> ReLU -> (Dropout = identity) ----
    h = jnp.dot(x_ref[...].astype(w1_ref.dtype), w1_ref[...],
                preferred_element_type=f32) + b1
    h = jnp.maximum(_layernorm(h, g1, be1, h_real), 0.0)

    # ---- block 2: Linear -> LayerNorm -> ReLU -> (Dropout = identity) ----
    h = jnp.dot(h.astype(w2_ref.dtype), w2_ref[...],
                preferred_element_type=f32) + b2
    h = jnp.maximum(_layernorm(h, g2, be2, h_real), 0.0)

    # ---- block 3: final Linear ----
    h = jnp.dot(h.astype(w3_ref.dtype), w3_ref[...],
                preferred_element_type=f32) + b3

    o_ref[...] = h.astype(o_ref.dtype)


def mlp_forward(x, params, *, tm=512):
    """x: [N, D_in]. params: dict of weights; Linear weights stored [in, out]."""
    N, D_in = x.shape
    H = params["w1"].shape[1]

    # Lane-dense feature dims.
    d_pad = _round_up(D_in, 128)
    h_pad = _round_up(H, 128)

    # Row tile: dtype-aware sublane packing; ensure >= 2 grid steps when the
    # batch would otherwise fit a single block (megacore / v7x utilization).
    itemsize = jnp.dtype(x.dtype).itemsize
    sub = {4: 8, 2: 16, 1: 32}.get(itemsize, 8)
    tm_cap = max(sub, _round_up(tm, sub))
    if N > tm_cap:
        tm_eff = tm_cap
    else:
        tm_eff = max(sub, _round_up(pl.cdiv(N, 2), sub))
    grid = pl.cdiv(N, tm_eff)

    # Lane padding only (no batch padding, no output row slice).
    x_p = _pad_to(x, (N, d_pad))

    w1 = _pad_to(params["w1"], (d_pad, h_pad))
    w2 = _pad_to(params["w2"], (h_pad, h_pad))
    w3 = _pad_to(params["w3"], (h_pad, h_pad))
    vec_rows = [_pad_to(params[k], (1, h_pad))
                for k in ("b1", "g1", "beta1", "b2", "g2", "beta2", "b3")]
    vecs = _pad_to(jnp.concatenate(vec_rows, axis=0), (8, h_pad))

    kernel = functools.partial(mlp_kernel, h_real=H)

    try:
        vmem_limit = int(pltpu.get_tpu_info().vmem_capacity_bytes) * 3 // 4
    except Exception:  # non-critical query; conservative default
        vmem_limit = 48 * 1024 * 1024

    param_bytes = sum(int(a.size) * a.dtype.itemsize for a in (w1, w2, w3, vecs))
    cost = pl.CostEstimate(
        flops=2 * N * (d_pad * h_pad + 2 * h_pad * h_pad),
        transcendentals=2 * N,  # one rsqrt per row per LayerNorm
        bytes_accessed=int(x_p.size) * x_p.dtype.itemsize + param_bytes
        + N * h_pad * itemsize,
    )

    def run(single_buffer_weights):
        use_sb = single_buffer_weights and hasattr(pl, "Buffered")

        def wspec(shape):
            # Weights / packed vectors are grid-invariant; single-buffering
            # halves their VMEM footprint (matters on v7x's 64 MiB/TC).
            if use_sb:
                return pl.BlockSpec(shape, lambda i: (0, 0),
                                    pipeline_mode=pl.Buffered(1))
            return pl.BlockSpec(shape, lambda i: (0, 0))

        grid_spec = pltpu.PrefetchScalarGridSpec(
            num_scalar_prefetch=0,
            grid=(grid,),
            in_specs=[
                pl.BlockSpec((tm_eff, d_pad), lambda i: (i, 0)),   # x tile
                wspec((d_pad, h_pad)),                             # w1
                wspec((h_pad, h_pad)),                             # w2
                wspec((h_pad, h_pad)),                             # w3
                wspec((8, h_pad)),                                 # packed vecs
            ],
            out_specs=pl.BlockSpec((tm_eff, h_pad), lambda i: (i, 0)),
        )
        return pl.pallas_call(
            kernel,
            out_shape=jax.ShapeDtypeStruct((N, h_pad), x.dtype),
            grid_spec=grid_spec,
            compiler_params=pltpu.CompilerParams(
                dimension_semantics=("parallel",),
                vmem_limit_bytes=vmem_limit),
            cost_estimate=cost,
        )(x_p, w1, w2, w3, vecs)

    try:
        out_p = run(True)
    except (TypeError, NotImplementedError):
        # pipeline_mode / pl.Buffered(1) unsupported by this JAX build:
        # fall back to default double-buffered weight blocks.
        out_p = run(False)

    return out_p if h_pad == H else out_p[:, :H]


def init_params(key, input_channels, hidden_channels):
    """Deterministic synthetic init. Linear weights stored as [in, out]."""
    ks = jax.random.split(key, 8)

    def lin(k, fan_in, fan_out):
        bound = 1.0 / jnp.sqrt(fan_in)
        kw, kb = jax.random.split(k)
        w = jax.random.uniform(kw, (fan_in, fan_out), jnp.float32, -bound, bound)
        b = jax.random.uniform(kb, (1, fan_out), jnp.float32, -bound, bound)
        return w, b

    w1, b1 = lin(ks[0], input_channels, hidden_channels)
    w2, b2 = lin(ks[1], hidden_channels, hidden_channels)
    w3, b3 = lin(ks[2], hidden_channels, hidden_channels)
    # LayerNorm affine params (PyTorch default init: gamma=1, beta=0)
    g1 = jnp.ones((1, hidden_channels), jnp.float32)
    beta1 = jnp.zeros((1, hidden_channels), jnp.float32)
    g2 = jnp.ones((1, hidden_channels), jnp.float32)
    beta2 = jnp.zeros((1, hidden_channels), jnp.float32)
    return dict(w1=w1, b1=b1, g1=g1, beta1=beta1,
                w2=w2, b2=b2, g2=g2, beta2=beta2,
                w3=w3, b3=b3)


def mlp_reference(x, p):
    """Pure-JAX reference for correctness check."""
    def ln(h, g, b):
        m = jnp.mean(h, -1, keepdims=True)
        v = jnp.mean((h - m) ** 2, -1, keepdims=True)
        return (h - m) * jax.lax.rsqrt(v + LN_EPS) * g + b

    h = x @ p["w1"] + p["b1"]
    h = jnp.maximum(ln(h, p["g1"], p["beta1"]), 0.0)
    h = h @ p["w2"] + p["b2"]
    h = jnp.maximum(ln(h, p["g2"], p["beta2"]), 0.0)
    return h @ p["w3"] + p["b3"]


if __name__ == "__main__":
    key = jax.random.PRNGKey(0)
    k_x, k_p, k_x2, k_p2 = jax.random.split(key, 4)

    # --- small shapes consistent with the module (batch=8, in=16, hidden=32) ---
    N, input_channels, hidden_channels = 8, 16, 32
    x = jax.random.normal(k_x, (N, input_channels), dtype=jnp.float32)
    params = init_params(k_p, input_channels, hidden_channels)

    out = jax.block_until_ready(mlp_forward(x, params))
    ref = mlp_reference(x, params)
    assert out.shape == (N, hidden_channels)
    assert jnp.allclose(out, ref, atol=1e-4, rtol=1e-4), "mismatch vs reference (f32 small)"

    # --- ragged batch + non-128 feature dims exercises padding + partial block ---
    N2, D2, H2 = 300, 48, 96
    x2 = jax.random.normal(k_x2, (N2, D2), dtype=jnp.float32)
    params2 = init_params(k_p2, D2, H2)
    out2 = jax.block_until_ready(mlp_forward(x2, params2))
    ref2 = mlp_reference(x2, params2)
    assert out2.shape == (N2, H2)
    assert jnp.allclose(out2, ref2, atol=1e-3, rtol=1e-3), "mismatch vs reference (f32 padded)"

    # --- bf16 operand path (bf16 matmuls with f32 accumulation) ---
    params_bf = {k: v.astype(jnp.bfloat16) for k, v in params2.items()}
    x_bf = x2.astype(jnp.bfloat16)
    out_bf = jax.block_until_ready(mlp_forward(x_bf, params_bf))
    ref_bf = mlp_reference(x_bf.astype(jnp.float32),
                           {k: v.astype(jnp.float32) for k, v in params_bf.items()})
    assert out_bf.shape == (N2, H2)
    assert jnp.allclose(out_bf.astype(jnp.float32), ref_bf, atol=1e-1, rtol=1e-1), \
        "mismatch vs reference (bf16)"

    print("KERNEL_OK")
</pallas_src>

<mosaic_0001>
module attributes {stable_mosaic.version = 11 : i64} {
  func.func @mlp_kernel(%arg0: i32, %arg1: memref<8x128xf32, #tpu.memory_space<vmem>>, %arg2: memref<128x128xf32, #tpu.memory_space<vmem>>, %arg3: memref<128x128xf32, #tpu.memory_space<vmem>>, %arg4: memref<128x128xf32, #tpu.memory_space<vmem>>, %arg5: memref<8x128xf32, #tpu.memory_space<vmem>>, %arg6: memref<8x128xf32, #tpu.memory_space<vmem>>) attributes {dimension_semantics = [#tpu.dimension_semantics<parallel>], iteration_bounds = array<i64: 1>, scalar_prefetch = 0 : i64, scratch_operands = 0 : i64, tpu.core_type = #tpu.core_type<tc>, window_params = [{transform_indices = @transform_0, window_bounds = array<i64: 8, 128>}, {pipeline_mode = #tpu.pipeline_mode<synchronous>, transform_indices = @transform_1, window_bounds = array<i64: 128, 128>}, {pipeline_mode = #tpu.pipeline_mode<synchronous>, transform_indices = @transform_2, window_bounds = array<i64: 128, 128>}, {pipeline_mode = #tpu.pipeline_mode<synchronous>, transform_indices = @transform_3, window_bounds = array<i64: 128, 128>}, {pipeline_mode = #tpu.pipeline_mode<synchronous>, transform_indices = @transform_4, window_bounds = array<i64: 8, 128>}, {transform_indices = @transform_5, window_bounds = array<i64: 8, 128>}]} {
    %c0 = arith.constant 0 : index
    %c0_0 = arith.constant 0 : index
    %0 = vector.load %arg5[%c0, %c0_0] : memref<8x128xf32, #tpu.memory_space<vmem>>, vector<8x128xf32>
    %1 = vector.extract_strided_slice %0 {offsets = [0, 0], sizes = [1, 128], strides = [1, 1]} : vector<8x128xf32> to vector<1x128xf32>
    %2 = vector.extract_strided_slice %0 {offsets = [1, 0], sizes = [1, 128], strides = [1, 1]} : vector<8x128xf32> to vector<1x128xf32>
    %3 = vector.extract_strided_slice %0 {offsets = [2, 0], sizes = [1, 128], strides = [1, 1]} : vector<8x128xf32> to vector<1x128xf32>
    %4 = vector.extract_strided_slice %0 {offsets = [3, 0], sizes = [1, 128], strides = [1, 1]} : vector<8x128xf32> to vector<1x128xf32>
    %5 = vector.extract_strided_slice %0 {offsets = [4, 0], sizes = [1, 128], strides = [1, 1]} : vector<8x128xf32> to vector<1x128xf32>
    %6 = vector.extract_strided_slice %0 {offsets = [5, 0], sizes = [1, 128], strides = [1, 1]} : vector<8x128xf32> to vector<1x128xf32>
    %7 = vector.extract_strided_slice %0 {offsets = [6, 0], sizes = [1, 128], strides = [1, 1]} : vector<8x128xf32> to vector<1x128xf32>
    %c0_1 = arith.constant 0 : index
    %c0_2 = arith.constant 0 : index
    %8 = vector.load %arg1[%c0_1, %c0_2] : memref<8x128xf32, #tpu.memory_space<vmem>>, vector<8x128xf32>
    %c0_3 = arith.constant 0 : index
    %c0_4 = arith.constant 0 : index
    %9 = vector.load %arg2[%c0_3, %c0_4] : memref<128x128xf32, #tpu.memory_space<vmem>>, vector<128x128xf32>
    %cst = arith.constant dense<0.000000e+00> : vector<8x128xf32>
    %10 = tpu.matmul %8, %9, %cst {dimension_numbers = #tpu.dot_dimension_numbers<[1], [0], [0], [1], [0, 0, 1, 1], [], []>} : vector<8x128xf32>, vector<128x128xf32>, vector<8x128xf32> -> vector<8x128xf32>
    %11 = vector.broadcast %1 : vector<1x128xf32> to vector<8x128xf32>
    %12 = arith.addf %10, %11 : vector<8x128xf32>
    %cst_5 = arith.constant dense<0.000000e+00> : vector<8xf32>
    %13 = vector.multi_reduction <add>, %12, %cst_5 [1] : vector<8x128xf32> to vector<8xf32>
    %14 = vector.shape_cast %13 : vector<8xf32> to vector<8x1xf32>
    %cst_6 = arith.constant 3.125000e-02 : f32
    %15 = vector.broadcast %cst_6 : f32 to vector<8x1xf32>
    %16 = arith.mulf %14, %15 : vector<8x1xf32>
    %17 = arith.mulf %12, %12 : vector<8x128xf32>
    %cst_7 = arith.constant dense<0.000000e+00> : vector<8xf32>
    %18 = vector.multi_reduction <add>, %17, %cst_7 [1] : vector<8x128xf32> to vector<8xf32>
    %19 = vector.shape_cast %18 : vector<8xf32> to vector<8x1xf32>
    %cst_8 = arith.constant 3.125000e-02 : f32
    %20 = vector.broadcast %cst_8 : f32 to vector<8x1xf32>
    %21 = arith.mulf %19, %20 : vector<8x1xf32>
    %22 = arith.mulf %16, %16 : vector<8x1xf32>
    %23 = arith.subf %21, %22 : vector<8x1xf32>
    %cst_9 = arith.constant 0.000000e+00 : f32
    %24 = vector.broadcast %cst_9 : f32 to vector<8x1xf32>
    %25 = arith.maximumf %23, %24 : vector<8x1xf32>
    %26 = vector.broadcast %16 : vector<8x1xf32> to vector<8x128xf32>
    %27 = arith.subf %12, %26 : vector<8x128xf32>
    %cst_10 = arith.constant 9.99999974E-6 : f32
    %28 = vector.broadcast %cst_10 : f32 to vector<8x1xf32>
    %29 = arith.addf %25, %28 : vector<8x1xf32>
    %30 = math.rsqrt %29 : vector<8x1xf32>
    %31 = vector.broadcast %30 : vector<8x1xf32> to vector<8x128xf32>
    %32 = arith.mulf %27, %31 : vector<8x128xf32>
    %33 = vector.broadcast %2 : vector<1x128xf32> to vector<8x128xf32>
    %34 = arith.mulf %32, %33 : vector<8x128xf32>
    %35 = vector.broadcast %3 : vector<1x128xf32> to vector<8x128xf32>
    %36 = arith.addf %34, %35 : vector<8x128xf32>
    %cst_11 = arith.constant 0.000000e+00 : f32
    %37 = vector.broadcast %cst_11 : f32 to vector<8x128xf32>
    %38 = arith.maximumf %36, %37 : vector<8x128xf32>
    %c0_12 = arith.constant 0 : index
    %c0_13 = arith.constant 0 : index
    %39 = vector.load %arg3[%c0_12, %c0_13] : memref<128x128xf32, #tpu.memory_space<vmem>>, vector<128x128xf32>
    %cst_14 = arith.constant dense<0.000000e+00> : vector<8x128xf32>
    %40 = tpu.matmul %38, %39, %cst_14 {dimension_numbers = #tpu.dot_dimension_numbers<[1], [0], [0], [1], [0, 0, 1, 1], [], []>} : vector<8x128xf32>, vector<128x128xf32>, vector<8x128xf32> -> vector<8x128xf32>
    %41 = vector.broadcast %4 : vector<1x128xf32> to vector<8x128xf32>
    %42 = arith.addf %40, %41 : vector<8x128xf32>
    %cst_15 = arith.constant dense<0.000000e+00> : vector<8xf32>
    %43 = vector.multi_reduction <add>, %42, %cst_15 [1] : vector<8x128xf32> to vector<8xf32>
    %44 = vector.shape_cast %43 : vector<8xf32> to vector<8x1xf32>
    %cst_16 = arith.constant 3.125000e-02 : f32
    %45 = vector.broadcast %cst_16 : f32 to vector<8x1xf32>
    %46 = arith.mulf %44, %45 : vector<8x1xf32>
    %47 = arith.mulf %42, %42 : vector<8x128xf32>
    %cst_17 = arith.constant dense<0.000000e+00> : vector<8xf32>
    %48 = vector.multi_reduction <add>, %47, %cst_17 [1] : vector<8x128xf32> to vector<8xf32>
    %49 = vector.shape_cast %48 : vector<8xf32> to vector<8x1xf32>
    %cst_18 = arith.constant 3.125000e-02 : f32
    %50 = vector.broadcast %cst_18 : f32 to vector<8x1xf32>
    %51 = arith.mulf %49, %50 : vector<8x1xf32>
    %52 = arith.mulf %46, %46 : vector<8x1xf32>
    %53 = arith.subf %51, %52 : vector<8x1xf32>
    %cst_19 = arith.constant 0.000000e+00 : f32
    %54 = vector.broadcast %cst_19 : f32 to vector<8x1xf32>
    %55 = arith.maximumf %53, %54 : vector<8x1xf32>
    %56 = vector.broadcast %46 : vector<8x1xf32> to vector<8x128xf32>
    %57 = arith.subf %42, %56 : vector<8x128xf32>
    %cst_20 = arith.constant 9.99999974E-6 : f32
    %58 = vector.broadcast %cst_20 : f32 to vector<8x1xf32>
    %59 = arith.addf %55, %58 : vector<8x1xf32>
    %60 = math.rsqrt %59 : vector<8x1xf32>
    %61 = vector.broadcast %60 : vector<8x1xf32> to vector<8x128xf32>
    %62 = arith.mulf %57, %61 : vector<8x128xf32>
    %63 = vector.broadcast %5 : vector<1x128xf32> to vector<8x128xf32>
    %64 = arith.mulf %62, %63 : vector<8x128xf32>
    %65 = vector.broadcast %6 : vector<1x128xf32> to vector<8x128xf32>
    %66 = arith.addf %64, %65 : vector<8x128xf32>
    %cst_21 = arith.constant 0.000000e+00 : f32
    %67 = vector.broadcast %cst_21 : f32 to vector<8x128xf32>
    %68 = arith.maximumf %66, %67 : vector<8x128xf32>
    %c0_22 = arith.constant 0 : index
    %c0_23 = arith.constant 0 : index
    %69 = vector.load %arg4[%c0_22, %c0_23] : memref<128x128xf32, #tpu.memory_space<vmem>>, vector<128x128xf32>
    %cst_24 = arith.constant dense<0.000000e+00> : vector<8x128xf32>
    %70 = tpu.matmul %68, %69, %cst_24 {dimension_numbers = #tpu.dot_dimension_numbers<[1], [0], [0], [1], [0, 0, 1, 1], [], []>} : vector<8x128xf32>, vector<128x128xf32>, vector<8x128xf32> -> vector<8x128xf32>
    %71 = vector.broadcast %7 : vector<1x128xf32> to vector<8x128xf32>
    %72 = arith.addf %70, %71 : vector<8x128xf32>
    %c0_25 = arith.constant 0 : index
    %c0_26 = arith.constant 0 : index
    %73 = vector.load %arg6[%c0_25, %c0_26] : memref<8x128xf32, #tpu.memory_space<vmem>>, vector<8x128xf32>
    tpu.vector_store %arg6[%c0_25, %c0_26], %72 {strides = array<i32>} : memref<8x128xf32, #tpu.memory_space<vmem>>, vector<8x128xf32>,
    return
  }
  func.func @transform_0(%arg0: i32) -> (i32, i32) {
    %c0_i32 = arith.constant 0 : i32
    %c0_i32_0 = arith.constant 0 : i32
    return %arg0, %c0_i32 : i32, i32
  }
  func.func @transform_1(%arg0: i32) -> (i32, i32) {
    %c0_i32 = arith.constant 0 : i32
    %c0_i32_0 = arith.constant 0 : i32
    %c0_i32_1 = arith.constant 0 : i32
    return %c0_i32, %c0_i32_0 : i32, i32
  }
  func.func @transform_2(%arg0: i32) -> (i32, i32) {
    %c0_i32 = arith.constant 0 : i32
    %c0_i32_0 = arith.constant 0 : i32
    %c0_i32_1 = arith.constant 0 : i32
    return %c0_i32, %c0_i32_0 : i32, i32
  }
  func.func @transform_3(%arg0: i32) -> (i32, i32) {
    %c0_i32 = arith.constant 0 : i32
    %c0_i32_0 = arith.constant 0 : i32
    %c0_i32_1 = arith.constant 0 : i32
    return %c0_i32, %c0_i32_0 : i32, i32
  }
  func.func @transform_4(%arg0: i32) -> (i32, i32) {
    %c0_i32 = arith.constant 0 : i32
    %c0_i32_0 = arith.constant 0 : i32
    %c0_i32_1 = arith.constant 0 : i32
    return %c0_i32, %c0_i32_0 : i32, i32
  }
  func.func @transform_5(%arg0: i32) -> (i32, i32) {
    %c0_i32 = arith.constant 0 : i32
    %c0_i32_0 = arith.constant 0 : i32
    return %arg0, %c0_i32 : i32, i32
  }
}

</mosaic_0001>

<bundles_post_ra>
// kernel: tpu_custom_call.1
= control target key start
LH: loop header
LB: loop body
LE: loop exit
PB: predicated region body
PF: predicated region fallthrough
CT: control target
= control target key end

     0   :  { %10 = vsyncpa [#allocation3], 0  ;;  %s874_s0 = inlined_call_operand.hbm [shape: f32[8,128], index: 0, kind: input, shape index: {}]   ;;  %s875_s1 = inlined_call_operand.hbm [shape: f32[128,128], index: 1, kind: input, shape index: {}]   ;;  %s876_s2 = inlined_call_operand.hbm [shape: f32[128,128], index: 2, kind: input, shape index: {}]   ;;  %s877_s3 = inlined_call_operand.hbm [shape: f32[128,128], index: 3, kind: input, shape index: {}]   ;;  %s878_s4 = inlined_call_operand.hbm [shape: f32[8,128], index: 4, kind: input, shape index: {}]   ;;  %s879_s5 = inlined_call_operand.hbm [shape: f32[8,128], index: 5, kind: output, shape index: {}]  }
   0x1   :  { %11 = vsyncpa [#allocation6], 0 }
   0x2   :  { %12 = vsyncpa [#allocation9], 0 }
   0x3   :  { %13 = vsyncpa [#allocation4], 0  ;;  %s723_s18 = smov [#allocation5]  }
   0x4   :  { %s29_s19 = sshll.u32 %s723_s18, 4  ;;  %s30_s19 = int_to_ptr.vmem [resolvable:$true] %s29_s19 }
   0x5   :  { %s603_s20 = scalar_lea.vmem %s30_s19, 2048  ;;  %p608_p1 = scmp.lt.s32.totalorder %s30_s19, %s30_s19 }
   0x6   :  { %p604_p0 = scmp.ne.s32.totalorder %s30_s19, %s603_s20  ;;  %p609_p2 = scmp.lt.s32.totalorder %s603_s20, %s603_s20 }
   0x8   :  { %p610_p3 = por %p609_p2, %p608_p1 }
   0xa   :  { %p611_p4 = pnand %p610_p3, %p604_p0 }
   0xc   :  { %614 = shalt.err (!%p611_p4)
}
   0xd   :  { %s724_s21 = smov 128   ;;  %s725_s22 = smov 8  }
   0xe   :  { %35 = dma.hbm_to_vmem [thread:$0]  %s875_s1, 2048, %s30_s19, [#allocation6], %s724_s21, %s724_s21, %s725_s22  }
   0xf   :  { %s726_s25 = smov [#allocation8]   ;;  %s727_s27 = smov [#allocation2]  }
  0x10   :  { %s53_s26 = sshll.u32 %s726_s25, 4  ;;  %s20_s28 = sshll.u32 %s727_s27, 4  ;;  %s54_s26 = int_to_ptr.vmem [resolvable:$true] %s53_s26  ;;  %s21_s28 = int_to_ptr.vmem [resolvable:$true] %s20_s28 }
  0x11   :  { %s623_s29 = scalar_lea.vmem %s54_s26, 2048  ;;  %p628_p6 = scmp.lt.s32.totalorder %s54_s26, %s54_s26 }
  0x12   :  { %p624_p5 = scmp.ne.s32.totalorder %s54_s26, %s623_s29  ;;  %p629_p7 = scmp.lt.s32.totalorder %s623_s29, %s623_s29 }
  0x14   :  { %p630_p8 = por %p629_p7, %p628_p6 }
  0x16   :  { %p631_p9 = pnand %p630_p8, %p624_p5 }
  0x18   :  { %634 = shalt.err (!%p631_p9)
}
  0x19   :  { %59 = dma.hbm_to_vmem [thread:$0]  %s877_s3, 2048, %s54_s26, [#allocation9], %s724_s21, %s724_s21, %s725_s22  }
  0x1a   :  { %s643_s1 = scalar_lea.vmem %s21_s28, 128  ;;  %p648_p11 = scmp.lt.s32.totalorder %s21_s28, %s21_s28 }
  0x1b   :  { %p644_p10 = scmp.ne.s32.totalorder %s21_s28, %s643_s1  ;;  %p649_p12 = scmp.lt.s32.totalorder %s643_s1, %s643_s1 }
  0x1d   :  { %p650_p13 = por %p649_p12, %p648_p11 }
  0x1f   :  { %p651_p0 = pnand %p650_p13, %p644_p10 }
  0x21   :  { %654 = shalt.err (!%p651_p0)
}
  0x22   :  { %23 = dma.hbm_to_vmem [thread:$0]  %s874_s0, 128, %s21_s28, [#allocation3]  }
  0x23   :  { %s728_s9 = smov [#allocation7]   ;;  %s729_s11 = smov [#allocation10]  }
  0x24   :  { %s41_s10 = sshll.u32 %s728_s9, 4  ;;  %s66_s12 = sshll.u32 %s729_s11, 4  ;;  %s42_s10 = int_to_ptr.vmem [resolvable:$true] %s41_s10  ;;  %s67_s12 = int_to_ptr.vmem [resolvable:$true] %s66_s12 }
  0x25   :  { %s663_s13 = scalar_lea.vmem %s42_s10, 2048  ;;  %p668_p2 = scmp.lt.s32.totalorder %s42_s10, %s42_s10 }
  0x26   :  { %p664_p1 = scmp.ne.s32.totalorder %s42_s10, %s663_s13  ;;  %p669_p3 = scmp.lt.s32.totalorder %s663_s13, %s663_s13 }
  0x28   :  { %p670_p4 = por %p669_p3, %p668_p2 }
  0x2a   :  { %p671_p5 = pnand %p670_p4, %p664_p1 }
  0x2c   :  { %674 = shalt.err (!%p671_p5)
}
  0x2d   :  { %47 = dma.hbm_to_vmem [thread:$0]  %s876_s2, 2048, %s42_s10, [#allocation6], %s724_s21, %s724_s21, %s725_s22  }
  0x2e   :  { %s683_s0 = scalar_lea.vmem %s67_s12, 128  ;;  %p688_p7 = scmp.lt.s32.totalorder %s67_s12, %s67_s12 }
  0x2f   :  { %p684_p6 = scmp.ne.s32.totalorder %s67_s12, %s683_s0  ;;  %p689_p8 = scmp.lt.s32.totalorder %s683_s0, %s683_s0 }
  0x31   :  { %p690_p9 = por %p689_p8, %p688_p7 }
  0x33   :  { %p691_p10 = pnand %p690_p9, %p684_p6 }
  0x35   :  { %694 = shalt.err (!%p691_p10)
}
  0x36   :  { %69 = dma.hbm_to_vmem [thread:$0]  %s878_s4, 128, %s67_s12, [#allocation9]  }
  0x37   :  { %715 = dma.done.wait [#allocation3], 128  }
  0x38   :  { %716 = vsyncadd [#allocation3], 4294967168 }
  0x39   :  { %717 = dma.done.wait [#allocation6], 4096  }
  0x3a   :  { %718 = vsyncadd [#allocation6], 4294963200 }
  0x3b   :  { %719 = dma.done.wait [#allocation9], 2176  }
  0x3c   :  { %720 = vsyncadd [#allocation9], 4294965120  ;;  %v730_v0 = vmov 0.0   ;;  %vm731_vm0 = vmmov 0   ;;  %v102_v1 = vld [vmem:[#allocation5 + $0x78] sm:$0xff]  ;;  %v101_v2 = vld [vmem:[#allocation5 + $0x70] sm:$0xff]  ;;  %v103_v18 = vlaneseq }
  0x3d   :  { %476 = vmatprep.subr.mxu0 %v730_v0  ;;  %508 = vmatprep.mubr.msk.f32.mxu0 %vm731_vm0, %v730_v0  ;;  %v100_v3 = vld [vmem:[#allocation5 + $0x68] sm:$0xff]  ;;  %v99_v4 = vld [vmem:[#allocation5 + $0x60] sm:$0xff]  ;;  %v98_v5 = vld [vmem:[#allocation5 + $0x58] sm:$0xff]  ;;  %s732_s2 = smov [#allocation11]  }
  0x3e   :  { %511 = vmatprep.subr.mxu1 %v730_v0  ;;  %543 = vmatprep.mubr.msk.f32.mxu1 %vm731_vm0, %v730_v0  ;;  %v97_v6 = vld [vmem:[#allocation5 + $0x50] sm:$0xff]  ;;  %v96_v7 = vld [vmem:[#allocation5 + $0x48] sm:$0xff]  ;;  %v95_v8 = vld [vmem:[#allocation5 + $0x40] sm:$0xff]  ;;  %v811_v19 = vshrl.u32 %v103_v18, 7  ;;  %s414_s4 = sshll.u32 %s732_s2, 4  ;;  %s415_s4 = int_to_ptr.vmem [resolvable:$true] %s414_s4 }
  0x3f   :  { %477 = vmatpush3.msra.mxu0 %v102_v1  ;;  %v94_v9 = vld [vmem:[#allocation5 + $0x38] sm:$0xff]  ;;  %v93_v10 = vld [vmem:[#allocation5 + $0x30] sm:$0xff]  ;;  %v92_v11 = vld [vmem:[#allocation5 + $0x28] sm:$0xff]  ;;  %s695_s17 = scalar_lea.vmem %s415_s4, 128  ;;  %p700_p12 = scmp.lt.s32.totalorder %s415_s4, %s415_s4 }
  0x40   :  { %478 = vmatprep.subr.mxu0 %v730_v0  ;;  %v91_v12 = vld [vmem:[#allocation5 + $0x20] sm:$0xff]  ;;  %v90_v13 = vld [vmem:[#allocation5 + $0x18] sm:$0xff]  ;;  %v89_v14 = vld [vmem:[#allocation5 + $0x10] sm:$0xff]  ;;  %v105_v20 = vsub.s32 0, %v811_v19  ;;  %v193_v51 = vsub.s32 1, %v811_v19  ;;  %v198_v52 = vsub.s32 2, %v811_v19  ;;  %p696_p11 = scmp.ne.s32.totalorder %s415_s4, %s695_s17  ;;  %p701_p13 = scmp.lt.s32.totalorder %s695_s17, %s695_s17 }
  0x41   :  { %479 = vmatpush3.msra.mxu0 %v101_v2  ;;  %v88_v15 = vld [vmem:[#allocation5 + $0x8] sm:$0xff]  ;;  %v87_v16 = vld [vmem:[#allocation5] sm:$0xff]  ;;  %v86_v17 = vld [vmem:[#allocation2] sm:$0xff]  ;;  %v220_v61 = vsub.s32 3, %v811_v19 }
  0x42   :  { %480 = vmatprep.subr.mxu0 %v730_v0  ;;  %v814_v21 = vld [vmem:[#allocation10] sm:$0xff]  ;;  %v217_v27 = vld [vmem:[#allocation7 + $0x78] sm:$0xff]  ;;  %v216_v28 = vld [vmem:[#allocation7 + $0x70] sm:$0xff]  ;;  %p702_p0 = por %p701_p13, %p700_p12 }
  0x43   :  { %481 = vmatpush3.msra.mxu0 %v100_v3  ;;  %v106_v22 = vrot.slane %v814_v21, %v105_v20  ;;  %512 = vmatpush3.msra.mxu1 %v217_v27  ;;  %v215_v29 = vld [vmem:[#allocation7 + $0x68] sm:$0xff]  ;;  %v214_v30 = vld [vmem:[#allocation7 + $0x60] sm:$0xff]  ;;  %v213_v31 = vld [vmem:[#allocation7 + $0x58] sm:$0xff]  ;;  %v194_v54 = vrot.slane %v814_v21, %v193_v51  ;;  %v199_v57 = vrot.slane %v814_v21, %v198_v52 }
  0x44   :  { %482 = vmatprep.subr.mxu0 %v730_v0  ;;  %513 = vmatprep.subr.mxu1 %v730_v0  ;;  %v212_v32 = vld [vmem:[#allocation7 + $0x50] sm:$0xff]  ;;  %v211_v33 = vld [vmem:[#allocation7 + $0x48] sm:$0xff]  ;;  %v210_v34 = vld [vmem:[#allocation7 + $0x40] sm:$0xff]  ;;  %v221_v62 = vrot.slane %v814_v21, %v220_v61  ;;  %p703_p1 = pnand %p702_p0, %p696_p11 }
  0x45   :  { %483 = vmatpush3.msra.mxu0 %v99_v4  ;;  %514 = vmatpush3.msra.mxu1 %v216_v28  ;;  %v209_v35 = vld [vmem:[#allocation7 + $0x38] sm:$0xff]  ;;  %v208_v36 = vld [vmem:[#allocation7 + $0x30] sm:$0xff]  ;;  %v207_v37 = vld [vmem:[#allocation7 + $0x28] sm:$0xff] }
  0x46   :  { %484 = vmatprep.subr.mxu0 %v730_v0  ;;  %515 = vmatprep.subr.mxu1 %v730_v0  ;;  %v206_v38 = vld [vmem:[#allocation7 + $0x20] sm:$0xff]  ;;  %v205_v39 = vld [vmem:[#allocation7 + $0x18] sm:$0xff]  ;;  %v204_v40 = vld [vmem:[#allocation7 + $0x10] sm:$0xff] }
  0x47   :  { %485 = vmatpush3.msra.mxu0 %v98_v5  ;;  %516 = vmatpush3.msra.mxu1 %v215_v29  ;;  %v203_v41 = vld [vmem:[#allocation7 + $0x8] sm:$0xff]  ;;  %v202_v42 = vld [vmem:[#allocation7] sm:$0xff]  ;;  %v332_v4 = vld [vmem:[#allocation8 + $0x78] sm:$0xff] }
  0x48   :  { %486 = vmatprep.subr.mxu0 %v730_v0  ;;  %517 = vmatprep.subr.mxu1 %v730_v0  ;;  %v331_v5 = vld [vmem:[#allocation8 + $0x70] sm:$0xff]  ;;  %v318_v18 = vld [vmem:[#allocation8 + $0x8] sm:$0xff]  ;;  %v317_v20 = vld [vmem:[#allocation8] sm:$0xff] }
  0x49   :  { %487 = vmatpush3.msra.mxu0 %v97_v6  ;;  %518 = vmatpush3.msra.mxu1 %v214_v30  ;;  %v330_v6 = vld [vmem:[#allocation8 + $0x68] sm:$0xff]  ;;  %v308_v30 = vsub.s32 4, %v811_v19 }
  0x4a   :  { %488 = vmatprep.subr.mxu0 %v730_v0  ;;  %519 = vmatprep.subr.mxu1 %v730_v0 }
  0x4b   :  { %489 = vmatpush3.msra.mxu0 %v96_v7  ;;  %520 = vmatpush3.msra.mxu1 %v213_v31  ;;  %v329_v7 = vld [vmem:[#allocation8 + $0x60] sm:$0xff]  ;;  %v313_v31 = vsub.s32 5, %v811_v19 }
  0x4c   :  { %490 = vmatprep.subr.mxu0 %v730_v0  ;;  %521 = vmatprep.subr.mxu1 %v730_v0 }
  0x4d   :  { %491 = vmatpush3.msra.mxu0 %v95_v8  ;;  %522 = vmatpush3.msra.mxu1 %v212_v32  ;;  %v328_v8 = vld [vmem:[#allocation8 + $0x58] sm:$0xff] }
  0x4e   :  { %492 = vmatprep.subr.mxu0 %v730_v0  ;;  %523 = vmatprep.subr.mxu1 %v730_v0 }
  0x4f   :  { %493 = vmatpush3.msra.mxu0 %v94_v9  ;;  %524 = vmatpush3.msra.mxu1 %v211_v33  ;;  %v327_v9 = vld [vmem:[#allocation8 + $0x50] sm:$0xff]  ;;  %v309_v33 = vrot.slane %v814_v21, %v308_v30 }
  0x50   :  { %494 = vmatprep.subr.mxu0 %v730_v0  ;;  %525 = vmatprep.subr.mxu1 %v730_v0 }
  0x51   :  { %495 = vmatpush3.msra.mxu0 %v93_v10  ;;  %526 = vmatpush3.msra.mxu1 %v210_v34  ;;  %v326_v10 = vld [vmem:[#allocation8 + $0x48] sm:$0xff] }
  0x52   :  { %496 = vmatprep.subr.mxu0 %v730_v0  ;;  %527 = vmatprep.subr.mxu1 %v730_v0 }
  0x53   :  { %497 = vmatpush3.msra.mxu0 %v92_v11  ;;  %528 = vmatpush3.msra.mxu1 %v209_v35  ;;  %v325_v11 = vld [vmem:[#allocation8 + $0x40] sm:$0xff]  ;;  %v314_v35 = vrot.slane %v814_v21, %v313_v31 }
  0x54   :  { %498 = vmatprep.subr.mxu0 %v730_v0  ;;  %529 = vmatprep.subr.mxu1 %v730_v0 }
  0x55   :  { %499 = vmatpush3.msra.mxu0 %v91_v12  ;;  %530 = vmatpush3.msra.mxu1 %v208_v36  ;;  %v324_v12 = vld [vmem:[#allocation8 + $0x38] sm:$0xff] }
  0x56   :  { %500 = vmatprep.subr.mxu0 %v730_v0  ;;  %531 = vmatprep.subr.mxu1 %v730_v0 }
  0x57   :  { %501 = vmatpush3.msra.mxu0 %v90_v13  ;;  %532 = vmatpush3.msra.mxu1 %v207_v37  ;;  %v323_v13 = vld [vmem:[#allocation8 + $0x30] sm:$0xff] }
  0x58   :  { %502 = vmatprep.subr.mxu0 %v730_v0  ;;  %533 = vmatprep.subr.mxu1 %v730_v0 }
  0x59   :  { %503 = vmatpush3.msra.mxu0 %v89_v14  ;;  %534 = vmatpush3.msra.mxu1 %v206_v38  ;;  %v322_v14 = vld [vmem:[#allocation8 + $0x28] sm:$0xff] }
  0x5a   :  { %504 = vmatprep.subr.mxu0 %v730_v0  ;;  %535 = vmatprep.subr.mxu1 %v730_v0 }
  0x5b   :  { %505 = vmatpush3.msra.mxu0 %v88_v15  ;;  %536 = vmatpush3.msra.mxu1 %v205_v39  ;;  %v321_v15 = vld [vmem:[#allocation8 + $0x20] sm:$0xff]  ;;  %v335_v39 = vsub.s32 6, %v811_v19 }
  0x5c   :  { %506 = vmatprep.subr.mxu0 %v730_v0  ;;  %537 = vmatprep.subr.mxu1 %v730_v0 }
  0x5d   :  { %507 = vmatpush3.msra.mxu0 %v87_v16  ;;  %538 = vmatpush3.msra.mxu1 %v204_v40  ;;  %v320_v16 = vld [vmem:[#allocation8 + $0x18] sm:$0xff]  ;;  %v336_v40 = vrot.slane %v814_v21, %v335_v39 }
  0x5e   :  { %509 = vmatmul.mubr.f32.vlgmr.msra.gmra.mxu0 %v86_v17  ;;  %546 = vmatprep.subr.mxu0 %v730_v0  ;;  %v319_v17 = vld [vmem:[#allocation8 + $0x10] sm:$0xff] }
  0x5f   :  { %578 = vmatprep.mubr.msk.f32.mxu0 %vm731_vm0, %v730_v0  ;;  %539 = vmatprep.subr.mxu1 %v730_v0 }
  0x60   :  { %540 = vmatpush3.msra.mxu1 %v203_v41  ;;  %547 = vmatpush3.msra.mxu0 %v332_v4 }
  0x61   :  { %541 = vmatprep.subr.mxu1 %v730_v0  ;;  %548 = vmatprep.subr.mxu0 %v730_v0 }
  0x62   :  { %542 = vmatpush3.msra.mxu1 %v202_v42  ;;  %549 = vmatpush3.msra.mxu0 %v331_v5 }
  0x63   :  { %550 = vmatprep.subr.mxu0 %v730_v0 }
  0x64   :  { %551 = vmatpush3.msra.mxu0 %v330_v6 }
  0x65   :  { %552 = vmatprep.subr.mxu0 %v730_v0 }
  0x66   :  { %553 = vmatpush3.msra.mxu0 %v329_v7 }
  0x67   :  { %554 = vmatprep.subr.mxu0 %v730_v0 }
  0x68   :  { %555 = vmatpush3.msra.mxu0 %v328_v8 }
  0x69   :  { %556 = vmatprep.subr.mxu0 %v730_v0 }
  0x6a   :  { %557 = vmatpush3.msra.mxu0 %v327_v9 }
  0x6b   :  { %558 = vmatprep.subr.mxu0 %v730_v0 }
  0x6c   :  { %559 = vmatpush3.msra.mxu0 %v326_v10 }
  0x6d   :  { %560 = vmatprep.subr.mxu0 %v730_v0 }
  0x6e   :  { %561 = vmatpush3.msra.mxu0 %v325_v11 }
  0x6f   :  { %562 = vmatprep.subr.mxu0 %v730_v0 }
  0x70   :  { %563 = vmatpush3.msra.mxu0 %v324_v12 }
  0x71   :  { %564 = vmatprep.subr.mxu0 %v730_v0 }
  0x72   :  { %565 = vmatpush3.msra.mxu0 %v323_v13 }
  0x73   :  { %566 = vmatprep.subr.mxu0 %v730_v0 }
  0x74   :  { %567 = vmatpush3.msra.mxu0 %v322_v14 }
  0x75   :  { %568 = vmatprep.subr.mxu0 %v730_v0 }
  0x76   :  { %569 = vmatpush3.msra.mxu0 %v321_v15 }
  0x77   :  { %570 = vmatprep.subr.mxu0 %v730_v0 }
  0x78   :  { %571 = vmatpush3.msra.mxu0 %v320_v16 }
  0x79   :  { %572 = vmatprep.subr.mxu0 %v730_v0 }
  0x7a   :  { %573 = vmatpush3.msra.mxu0 %v319_v17 }
  0x7b   :  { %574 = vmatprep.subr.mxu0 %v730_v0 }
  0x7c   :  { %575 = vmatpush3.msra.mxu0 %v318_v18 }
  0x7d   :  { %576 = vmatprep.subr.mxu0 %v730_v0 }
  0x7e   :  { %577 = vmatpush3.msra.mxu0 %v317_v20 }
 0x11e   :  { %v173_v23 = vpop.f32.mrf.mxu0 }
 0x11f   :  { %v817_v24 = vadd.f32 %v173_v23, %v106_v22 }
 0x120   :  { %v510_v25 = vpop.f32.mrf.mxu0 }
 0x121   :  { %177 = vadd.xlane.f32.xlu0 %v817_v24  ;;  %v180_v26 = vmul.f32 %v817_v24, %v817_v24 }
 0x125   :  { %181 = vadd.xlane.f32.xlu0 %v180_v26 }
 0x1aa   :  { %v178_v43 = vpop.xlane.xlu0 %177 }
 0x1ab   :  { %v179_v44 = vmul.f32 0.03125, %v178_v43 }
 0x1ad   :  { %v184_v46 = vmul.f32 %v179_v44, %v179_v44  ;;  %v187_v53 = vsub.f32 %v817_v24, %v179_v44 }
 0x1ae   :  { %v182_v45 = vpop.xlane.xlu0 %181 }
 0x1af   :  { %v183_v47 = vmul.f32 0.03125, %v182_v45 }
 0x1b1   :  { %v185_v48 = vsub.f32 %v183_v47, %v184_v46 }
 0x1b3   :  { %v186_v49 = vmax.f32 %v185_v48, 0.0 }
 0x1b5   :  { %v188_v50 = vadd.f32 1e-05, %v186_v49 }
 0x1b7   :  { %591 = vrsqrt.f32 %v188_v50 }
 0x1c4   :  { %v592_v55 = vpop.eup %591 }
 0x1c5   :  { %v190_v56 = vmul.f32 %v592_v55, %v187_v53 }
 0x1c7   :  { %v195_v58 = vmul.f32 %v194_v54, %v190_v56 }
 0x1c9   :  { %v200_v59 = vadd.f32 %v199_v57, %v195_v58 }
 0x1cb   :  { %v201_v60 = vmax.f32 %v200_v59, 0.0 }
 0x1cd   :  { %544 = vmatmul.mubr.f32.vlgmr.msra.gmra.mxu1 %v201_v60 }
 0x28d   :  { %v288_v63 = vpop.f32.mrf.mxu1 }
 0x28e   :  { %v844_v1 = vadd.f32 %v288_v63, %v221_v62 }
 0x28f   :  { %v545_v2 = vpop.f32.mrf.mxu1 }
 0x290   :  { %292 = vadd.xlane.f32.xlu1 %v844_v1  ;;  %v295_v3 = vmul.f32 %v844_v1, %v844_v1 }
 0x294   :  { %296 = vadd.xlane.f32.xlu1 %v295_v3 }
 0x319   :  { %v293_v22 = vpop.xlane.xlu1 %292 }
 0x31a   :  { %v294_v23 = vmul.f32 0.03125, %v293_v22 }
 0x31c   :  { %v299_v25 = vmul.f32 %v294_v23, %v294_v23  ;;  %v302_v32 = vsub.f32 %v844_v1, %v294_v23 }
 0x31d   :  { %v297_v24 = vpop.xlane.xlu1 %296 }
 0x31e   :  { %v298_v26 = vmul.f32 0.03125, %v297_v24 }
 0x320   :  { %v300_v27 = vsub.f32 %v298_v26, %v299_v25 }
 0x322   :  { %v301_v28 = vmax.f32 %v300_v27, 0.0 }
 0x324   :  { %v303_v29 = vadd.f32 1e-05, %v301_v28 }
 0x326   :  { %593 = vrsqrt.f32 %v303_v29 }
 0x333   :  { %v594_v34 = vpop.eup %593 }
 0x334   :  { %v305_v0 = vmul.f32 %v594_v34, %v302_v32 }
 0x336   :  { %v310_v36 = vmul.f32 %v309_v33, %v305_v0 }
 0x338   :  { %v315_v37 = vadd.f32 %v314_v35, %v310_v36 }
 0x33a   :  { %v316_v38 = vmax.f32 %v315_v37, 0.0 }
 0x33c   :  { %579 = vmatmul.mubr.f32.vlgmr.msra.gmra.mxu0 %v316_v38 }
 0x3fc   :  { %v403_v41 = vpop.f32.mrf.mxu0 }
 0x3fd   :  { %v404_v42 = vadd.f32 %v403_v41, %v336_v40 }
 0x3fe   :  { %v580_v43 = vpop.f32.mrf.mxu0 }
 0x3ff   :  { %407 = vst [vmem:[#allocation11] sm:$0xff] %v404_v42 }
 0x400   :  { %706 = shalt.err (!%p703_p1)
}
 0x401   :  { %417 = dma.vmem_to_hbm [thread:$0]  %s415_s4, 128, %s879_s5, [#allocation4]  }
 0x402   :  { %721 = dma.done.wait [#allocation4], 128  }
 0x403   :  { %722 = vsyncadd [#allocation4], 4294967168 }
 0x404   :  { %421 = vsyncpa [#allocation3], 1 }
 0x405   :  { %422 = vsyncpa [#allocation6], 1 }
 0x406   :  { %423 = vsyncpa [#allocation9], 1 }
 0x407   :  { %424 = vsyncpa [#allocation4], 1 }

</bundles_post_ra>
